<compile_context>
chip_gen: v6e
topology: v6e:2x2x1
jax: 0.10.0
libtpu: 0.0.40
codegen_flags: <defaults>
</compile_context>

<pallas_src>
import functools
import math

import jax
import jax.numpy as jnp
from jax.experimental import pallas as pl
from jax.experimental.pallas import tpu as pltpu


def _round_up(x, m):
    return ((x + m - 1) // m) * m


def _cdiv(a, b):
    return (a + b - 1) // b


_LANES = 128
_GROUPS_PER_FLUSH = 4  # fold this many 128-lane groups before each accumulator RMW


def _linear1_kernel(x_ref, w_ref, b_ref, o_ref, acc_ref, *, K, TK, nk):
    # x_ref: (TB, TK) VMEM (streamed)      w_ref: (nk, TK) VMEM (resident)
    # b_ref: (1, 1) f32 SMEM               o_ref: (TB, 1) VMEM
    # acc_ref: (TB, 128) f32 VMEM scratch
    k = pl.program_id(1)

    @pl.when(k == 0)
    def _():
        acc_ref[...] = jnp.zeros_like(acc_ref)

    n_groups = TK // _LANES
    any_mask = (nk * TK) > K          # static: do we ever read past the real K?
    k_base = k * TK
    if any_mask:
        # Hoisted once (JAX does not CSE broadcast_in_dim inside the group loop).
        lane = jax.lax.broadcasted_iota(jnp.int32, (1, _LANES), 1)

    # Pure-VPU multiply/accumulate over 128-lane groups; no cross-lane work in the loop.
    for g0 in range(0, n_groups, _GROUPS_PER_FLUSH):
        part = None
        for g in range(g0, min(g0 + _GROUPS_PER_FLUSH, n_groups)):
            lo = g * _LANES
            xg = x_ref[:, lo:lo + _LANES].astype(jnp.float32)
            # Static test: can this lane-group overhang K (only possible on the last
            # k step)?  If so, zero the garbage lanes before the MAC.
            if any_mask and ((nk - 1) * TK + lo + _LANES > K):
                xg = jnp.where(k_base + lo + lane < K, xg, 0.0)
            wg = w_ref[pl.ds(k, 1), lo:lo + _LANES].astype(jnp.float32)  # (1, 128)
            term = xg * wg
            part = term if part is None else part + term
        acc_ref[...] += part

    @pl.when(k == nk - 1)
    def _():
        # Single cross-lane (XLU) reduce + bias + downcast, once per batch tile.
        total = jnp.sum(acc_ref[...], axis=-1, keepdims=True)
        o_ref[...] = (total + b_ref[0, 0]).astype(o_ref.dtype)


def mlp_linear1_forward(x, weight, bias, *, tb_max=512, tile_bytes=8 * 1024 * 1024):
    """Forward of MLPLinear1Layer: Linear(input_size, 1)(x.view(B, -1)).

    x: (B, ...) float array; weight: (1, input_size); bias: (1,).
    """
    B = x.shape[0]
    x2d = x.reshape(B, -1)                 # the .view(B, -1) flatten; no copy, no cast
    K = x2d.shape[1]
    itemsize = x2d.dtype.itemsize
    out_dtype = x2d.dtype

    # --- batch tile: multiple of 8 sublanes; keep >=2 blocks so v7x's 2 TCs both work.
    tb_max = max(8, (tb_max // 8) * 8)
    TB = min(tb_max, _round_up(B, 8))
    while TB > 8 and _cdiv(B, TB) < 2:
        TB = _round_up(TB // 2, 8)
    grid_b = _cdiv(B, TB)

    # --- K tile: 128-multiple sized so one x tile is ~tile_bytes (amortizes per-step
    # overhead; two buffers stay well below v7x's 64 MiB VMEM).
    tk_cap = max(_LANES, (tile_bytes // (TB * itemsize)) // _LANES * _LANES)
    TK = int(min(tk_cap, _round_up(K, _LANES)))
    grid_k = _cdiv(K, TK)
    Kp = grid_k * TK

    # Only the tiny weight row is padded (zeros); x is never padded or copied.
    w_row = weight.reshape(1, K)
    if Kp != K:
        w_row = jnp.pad(w_row, ((0, 0), (0, Kp - K)))
    w_res = w_row.reshape(grid_k, TK)      # resident layout: row k = k-th K tile
    b_smem = bias.reshape(1, 1).astype(jnp.float32)

    kernel = functools.partial(_linear1_kernel, K=K, TK=TK, nk=grid_k)

    # VMEM budget: double-buffered x tile + resident weight + accumulator (+ headroom).
    working = (2 * TB * TK * itemsize
               + 2 * Kp * w_res.dtype.itemsize
               + TB * _LANES * 4
               + 2 * TB * itemsize)
    vmem_limit = min(int(working * 1.5) + (8 << 20), 48 << 20)

    out = pl.pallas_call(
        kernel,
        out_shape=jax.ShapeDtypeStruct((B, 1), out_dtype),
        grid_spec=pltpu.PrefetchScalarGridSpec(
            num_scalar_prefetch=0,
            grid=(grid_b, grid_k),
            in_specs=[
                pl.BlockSpec((TB, TK), lambda i, k: (i, k)),        # streamed x tile
                pl.BlockSpec((grid_k, TK), lambda i, k: (0, 0)),    # resident weight
                pl.BlockSpec(memory_space=pltpu.MemorySpace.SMEM),  # bias scalar
            ],
            out_specs=pl.BlockSpec((TB, 1), lambda i, k: (i, 0)),
            scratch_shapes=[pltpu.VMEM((TB, _LANES), jnp.float32)],
        ),
        compiler_params=pltpu.CompilerParams(
            dimension_semantics=("parallel", "arbitrary"),
            vmem_limit_bytes=vmem_limit),
        # TODO(synk): sweep pipeline_mode=pl.Buffered(3) on the x spec for v7x.
    )(x2d, w_res, b_smem)

    return out


if __name__ == "__main__":
    key = jax.random.PRNGKey(0)
    k_x, k_w, k_b, k_x2, k_w2, k_b2 = jax.random.split(key, 6)

    # Case 1: module-style input — batch=2, x (2, 4, 16) flattened to 64 features.
    B, C, S = 2, 4, 16
    input_size = C * S
    x = jax.random.normal(k_x, (B, C, S), dtype=jnp.float32)
    bound = 1.0 / math.sqrt(input_size)          # nn.Linear-style init
    weight = jax.random.uniform(k_w, (1, input_size), minval=-bound, maxval=bound,
                                dtype=jnp.float32)
    bias = jax.random.uniform(k_b, (1,), minval=-bound, maxval=bound, dtype=jnp.float32)

    out = jax.block_until_ready(mlp_linear1_forward(x, weight, bias))
    ref = x.reshape(B, -1) @ weight.T + bias
    assert out.shape == (B, 1)
    assert jnp.allclose(out, ref, atol=1e-5, rtol=1e-5), "case 1 mismatch vs reference"

    # Case 2: ragged B and multi-step K reduction (exercises masking + accumulator),
    # forcing tiny tiles so grid = (2, 3).
    B2, K2 = 20, 300
    x2 = jax.random.normal(k_x2, (B2, K2), dtype=jnp.float32)
    w2 = jax.random.uniform(k_w2, (1, K2), minval=-0.05, maxval=0.05, dtype=jnp.float32)
    b2 = jax.random.uniform(k_b2, (1,), minval=-0.05, maxval=0.05, dtype=jnp.float32)
    out2 = jax.block_until_ready(mlp_linear1_forward(x2, w2, b2, tile_bytes=8192))
    ref2 = x2 @ w2.T + b2
    assert out2.shape == (B2, 1)
    assert jnp.allclose(out2, ref2, atol=1e-5, rtol=1e-5), "case 2 mismatch vs reference"

    print("KERNEL_OK")
</pallas_src>

<mosaic_0001>
module attributes {stable_mosaic.version = 11 : i64} {
  func.func @_linear1_kernel(%arg0: i32, %arg1: i32, %arg2: memref<8x128xf32, #tpu.memory_space<vmem>>, %arg3: memref<1x128xf32, #tpu.memory_space<vmem>>, %arg4: memref<1x1xf32, #tpu.memory_space<smem>>, %arg5: memref<8x1xf32, #tpu.memory_space<vmem>>, %arg6: memref<8x128xf32, #tpu.memory_space<vmem>>) attributes {dimension_semantics = [#tpu.dimension_semantics<parallel>, #tpu.dimension_semantics<arbitrary>], iteration_bounds = array<i64: 1, 1>, scalar_prefetch = 0 : i64, scratch_operands = 1 : i64, tpu.core_type = #tpu.core_type<tc>, window_params = [{transform_indices = @transform_0, window_bounds = array<i64: 8, 128>}, {pipeline_mode = #tpu.pipeline_mode<synchronous>, transform_indices = @transform_1, window_bounds = array<i64: 1, 128>}, {transform_indices = @transform_2, window_bounds = array<i64: 1, 1>}, {transform_indices = @transform_3, window_bounds = array<i64: 8, 1>}]} {
    %c0_i32 = arith.constant 0 : i32
    %0 = arith.cmpi eq, %arg1, %c0_i32 : i32
    %1 = arith.extui %0 : i1 to i32
    %c0_i32_0 = arith.constant 0 : i32
    %2 = arith.cmpi ne, %1, %c0_i32_0 : i32
    scf.if %2 {
      %cst_10 = arith.constant 0.000000e+00 : f32
      %25 = vector.broadcast %cst_10 : f32 to vector<8x128xf32>
      %c0_11 = arith.constant 0 : index
      %c0_12 = arith.constant 0 : index
      %26 = vector.load %arg6[%c0_11, %c0_12] : memref<8x128xf32, #tpu.memory_space<vmem>>, vector<8x128xf32>
      tpu.vector_store %arg6[%c0_11, %c0_12], %25 {strides = array<i32>} : memref<8x128xf32, #tpu.memory_space<vmem>>, vector<8x128xf32>,
    } else {
    }
    %c128_i32 = arith.constant 128 : i32
    %3 = arith.muli %arg1, %c128_i32 : i32
    %4 = tpu.iota {dimensions = array<i32: 1>} : vector<1x128xi32>
    %c0 = arith.constant 0 : index
    %c0_1 = arith.constant 0 : index
    %5 = vector.load %arg2[%c0, %c0_1] : memref<8x128xf32, #tpu.memory_space<vmem>>, vector<8x128xf32>
    %c0_i32_2 = arith.constant 0 : i32
    %6 = arith.addi %3, %c0_i32_2 : i32
    %7 = vector.broadcast %6 : i32 to vector<1x128xi32>
    %8 = arith.addi %7, %4 : vector<1x128xi32>
    %c64_i32 = arith.constant 64 : i32
    %9 = vector.broadcast %c64_i32 : i32 to vector<1x128xi32>
    %10 = arith.cmpi slt, %8, %9 : vector<1x128xi32>
    %cst = arith.constant 0.000000e+00 : f32
    %11 = vector.shape_cast %10 : vector<1x128xi1> to vector<1x128xi1>
    %12 = vector.broadcast %11 : vector<1x128xi1> to vector<8x128xi1>
    %13 = vector.broadcast %cst : f32 to vector<8x128xf32>
    %14 = arith.select %12, %5, %13 : vector<8x128xi1>, vector<8x128xf32>
    %15 = arith.index_cast %arg1 : i32 to index
    %c0_3 = arith.constant 0 : index
    %16 = vector.load %arg3[%15, %c0_3] : memref<1x128xf32, #tpu.memory_space<vmem>>, vector<1x128xf32>
    %17 = vector.broadcast %16 : vector<1x128xf32> to vector<8x128xf32>
    %18 = arith.mulf %14, %17 : vector<8x128xf32>
    %c0_4 = arith.constant 0 : index
    %c0_5 = arith.constant 0 : index
    %19 = vector.load %arg6[%c0_4, %c0_5] : memref<8x128xf32, #tpu.memory_space<vmem>>, vector<8x128xf32>
    %20 = arith.addf %19, %18 : vector<8x128xf32>
    %c0_6 = arith.constant 0 : index
    %c0_7 = arith.constant 0 : index
    %21 = vector.load %arg6[%c0_6, %c0_7] : memref<8x128xf32, #tpu.memory_space<vmem>>, vector<8x128xf32>
    tpu.vector_store %arg6[%c0_6, %c0_7], %20 {strides = array<i32>} : memref<8x128xf32, #tpu.memory_space<vmem>>, vector<8x128xf32>,
    %c0_i32_8 = arith.constant 0 : i32
    %22 = arith.cmpi eq, %arg1, %c0_i32_8 : i32
    %23 = arith.extui %22 : i1 to i32
    %c0_i32_9 = arith.constant 0 : i32
    %24 = arith.cmpi ne, %23, %c0_i32_9 : i32
    scf.if %24 {
      %c0_10 = arith.constant 0 : index
      %c0_11 = arith.constant 0 : index
      %25 = vector.load %arg6[%c0_10, %c0_11] : memref<8x128xf32, #tpu.memory_space<vmem>>, vector<8x128xf32>
      %cst_12 = arith.constant dense<0.000000e+00> : vector<8xf32>
      %26 = vector.multi_reduction <add>, %25, %cst_12 [1] : vector<8x128xf32> to vector<8xf32>
      %27 = vector.shape_cast %26 : vector<8xf32> to vector<8x1xf32>
      %c0_13 = arith.constant 0 : index
      %c0_14 = arith.constant 0 : index
      %28 = memref.load %arg4[%c0_13, %c0_14] : memref<1x1xf32, #tpu.memory_space<smem>>
      %29 = vector.broadcast %28 : f32 to vector<8x1xf32>
      %30 = arith.addf %27, %29 : vector<8x1xf32>
      %c0_15 = arith.constant 0 : index
      %c0_16 = arith.constant 0 : index
      %31 = vector.load %arg5[%c0_15, %c0_16] : memref<8x1xf32, #tpu.memory_space<vmem>>, vector<8x1xf32>
      tpu.vector_store %arg5[%c0_15, %c0_16], %30 {strides = array<i32>} : memref<8x1xf32, #tpu.memory_space<vmem>>, vector<8x1xf32>,
    } else {
    }
    return
  }
  func.func @transform_0(%arg0: i32, %arg1: i32) -> (i32, i32) {
    %c0_i32 = arith.constant 0 : i32
    return %arg0, %arg1 : i32, i32
  }
  func.func @transform_1(%arg0: i32, %arg1: i32) -> (i32, i32) {
    %c0_i32 = arith.constant 0 : i32
    %c0_i32_0 = arith.constant 0 : i32
    %c0_i32_1 = arith.constant 0 : i32
    return %c0_i32, %c0_i32_0 : i32, i32
  }
  func.func @transform_2(%arg0: i32, %arg1: i32) -> (i32, i32) {
    %c0_i32 = arith.constant 0 : i32
    %c0_i32_0 = arith.constant 0 : i32
    %c0_i32_1 = arith.constant 0 : i32
    return %c0_i32, %c0_i32_0 : i32, i32
  }
  func.func @transform_3(%arg0: i32, %arg1: i32) -> (i32, i32) {
    %c0_i32 = arith.constant 0 : i32
    %c0_i32_0 = arith.constant 0 : i32
    return %arg0, %c0_i32 : i32, i32
  }
}

</mosaic_0001>

<bundles_post_ra>
// kernel: tpu_custom_call.1
= control target key start
LH: loop header
LB: loop body
LE: loop exit
PB: predicated region body
PF: predicated region fallthrough
CT: control target
= control target key end

     0   :  { %v21_v0 = vlaneseq  ;;  %vm50_vm1 = vcmask 7168   ;;  %s126_s0 = inlined_call_operand.vmem [shape: f32[2,64], index: 0, kind: input, shape index: {}]   ;;  %s127_s1 = inlined_call_operand.vmem [shape: f32[1,128], index: 1, kind: input, shape index: {}]   ;;  %s128_s2 = inlined_call_operand.<no memory space> [shape: f32[1,1], index: 2, kind: input, shape index: {}]   ;;  %s129_s3 = inlined_call_operand.vmem [shape: f32[2,1], index: 3, kind: output, shape index: {}]  }
   0x1   :  { %v23_v2 = vld [vmem:[%s126_s0] sm:$0xff]  ;;  %v48_v6 = vstv %s128_s2 }
   0x2   :  { %v22_v1 = vand.u32 127, %v21_v0  ;;  %v93_v3 = vld [vmem:[%s127_s1] ss:$0 sm:$0xff] }
   0x4   :  { %vm26_vm0 = vcmp.lt.s32.totalorder %v22_v1, 64 }
   0x5   :  { %v29_v4 = vsel %vm26_vm0, %v23_v2, 0.0 }
   0x6   :  { %v37_v5 = vmul.f32 %v93_v3, %v29_v4 }
   0x8   :  { %45 = vadd.xlane.f32.xlu0 %v37_v5 }
  0x91   :  { %v46_v7 = vpop.xlane.xlu0 %45 }
  0x92   :  { %v49_v8 = vadd.f32 %v48_v6, %v46_v7 }
  0x94   :  { %51 = vst.msk [vmem:[#allocation4] sm:$0xff] %vm50_vm1, %v49_v8 }
  0x9b   :  { %v70_v9 = vld [vmem:[#allocation4] sm:$0x3] }
  0x9c   :  { %71 = vst [vmem:[%s129_s3] sm:$0x3] %v70_v9 }

</bundles_post_ra>
